<compile_context>
chip_gen: v7x
topology: tpu7x:2x2x1
jax: 0.10.0
libtpu: 0.0.40
codegen_flags: <defaults>
</compile_context>

<pallas_src>
import functools

import jax
import jax.numpy as jnp
from jax.experimental import pallas as pl
from jax.experimental.pallas import tpu as pltpu


# ----------------------------------------------------------------------------
# small helpers
# ----------------------------------------------------------------------------

def _round_up(x, m):
    return (x + m - 1) // m * m


def _prod(xs):
    r = 1
    for x in xs:
        r *= x
    return r


def _pick_tm(M):
    """Whole-M block (block == full dims, no padding) for small/odd M;
    split big SA/FP layers into 2 parallel blocks so v7x's 2nd core has work."""
    if M >= 1024 and M % 32 == 0:
        return M // 2
    return M


def _apply_act(r, activation):
    if activation == "relu":
        return jnp.maximum(r, 0.0)
    if activation == "leaky":
        return jnp.where(r >= 0.0, r, 0.2 * r)
    if activation == "sigmoid":
        # exact sigmoid for probability outputs (matches reference precision)
        return 1.0 / (1.0 + jnp.exp(-r))
    return r


# ----------------------------------------------------------------------------
# Fused linear / MLP-chain kernel (1..4 matmuls, intermediates stay in VMEM)
# ----------------------------------------------------------------------------

def _make_chain_kernel(acts):
    n = len(acts)

    def kernel(*refs):
        x_ref = refs[0]
        o_ref = refs[-1]
        h = x_ref[...]
        for i in range(n):
            w = refs[1 + 2 * i][...]
            b = refs[2 + 2 * i][...]
            h = jnp.dot(h.astype(jnp.bfloat16), w,
                        preferred_element_type=jnp.float32) + b
            h = _apply_act(h, acts[i])
        o_ref[...] = h.astype(o_ref.dtype)

    return kernel


@functools.lru_cache(maxsize=None)
def _chain_call(M, tm, dims, acts, out_dtype):
    n = len(acts)
    in_specs = [pl.BlockSpec((tm, dims[0]), lambda i: (i, 0))]
    for j in range(n):
        in_specs.append(pl.BlockSpec((dims[j], dims[j + 1]), lambda i: (0, 0)))
        in_specs.append(pl.BlockSpec((1, dims[j + 1]), lambda i: (0, 0)))
    fn = pl.pallas_call(
        _make_chain_kernel(acts),
        out_shape=jax.ShapeDtypeStruct((M, dims[-1]), out_dtype),
        grid_spec=pltpu.PrefetchScalarGridSpec(
            num_scalar_prefetch=0,
            grid=(M // tm,),
            in_specs=in_specs,
            out_specs=pl.BlockSpec((tm, dims[-1]), lambda i: (i, 0))),
        compiler_params=pltpu.CompilerParams(
            dimension_semantics=("parallel",)),
    )
    return jax.jit(fn)


def pallas_mlp_chain(x, layers, acts, out_dtype=jnp.float32):
    """act_n(...act_1(x @ w1 + b1)... @ wn + bn); all intermediates in VMEM."""
    lead = x.shape[:-1]
    K = x.shape[-1]
    M = _prod(lead)
    dims = (K,) + tuple(p["w"].shape[1] for p in layers)
    for p, din in zip(layers, dims):
        assert p["w"].shape[0] == din, (p["w"].shape, din)
    xm = x.reshape(M, K).astype(jnp.bfloat16)
    tm = _pick_tm(M)
    args = [xm]
    for p in layers:
        args.append(p["w"])
        args.append(p["b"])
    out = _chain_call(M, tm, dims, tuple(acts), out_dtype)(*args)
    return out.reshape(lead + (dims[-1],))


def pallas_linear(x, p, activation=None, out_dtype=jnp.float32):
    return pallas_mlp_chain(x, [p], (activation,), out_dtype)


# ----------------------------------------------------------------------------
# Fully fused ResBlock kernel (fc3 branch + fc1/fc2 + residual + leaky [+ tail])
# ----------------------------------------------------------------------------

def _make_resblock_kernel(has_fc3, final_nl, has_tail):
    def kernel(*refs):
        x_ref, w1, b1, w2, b2 = refs[:5]
        pos = 5
        if has_fc3:
            w3, b3 = refs[pos], refs[pos + 1]
            pos += 2
        if has_tail:
            wt, bt = refs[pos], refs[pos + 1]
            pos += 2
        o_ref = refs[pos]

        x = x_ref[...].astype(jnp.float32)
        xb = x.astype(jnp.bfloat16)
        h = jnp.dot(xb, w1[...], preferred_element_type=jnp.float32) + b1[...]
        h = _apply_act(h, "leaky")
        h = jnp.dot(h.astype(jnp.bfloat16), w2[...],
                    preferred_element_type=jnp.float32) + b2[...]
        if has_fc3:
            xin = jnp.dot(xb, w3[...], preferred_element_type=jnp.float32) + b3[...]
            xin = _apply_act(xin, "leaky")
        else:
            xin = x
        out = xin + h
        if final_nl:
            out = _apply_act(out, "leaky")
        if has_tail:
            out = jnp.dot(out.astype(jnp.bfloat16), wt[...],
                          preferred_element_type=jnp.float32) + bt[...]
        o_ref[...] = out.astype(o_ref.dtype)

    return kernel


@functools.lru_cache(maxsize=None)
def _resblock_call(M, Fin, H, Fout, tail_dim, has_fc3, final_nl):
    has_tail = tail_dim > 0
    out_dim = tail_dim if has_tail else Fout
    in_specs = [pl.BlockSpec((M, Fin), lambda i: (0, 0)),
                pl.BlockSpec((Fin, H), lambda i: (0, 0)),
                pl.BlockSpec((1, H), lambda i: (0, 0)),
                pl.BlockSpec((H, Fout), lambda i: (0, 0)),
                pl.BlockSpec((1, Fout), lambda i: (0, 0))]
    if has_fc3:
        in_specs += [pl.BlockSpec((Fin, Fout), lambda i: (0, 0)),
                     pl.BlockSpec((1, Fout), lambda i: (0, 0))]
    if has_tail:
        in_specs += [pl.BlockSpec((Fout, tail_dim), lambda i: (0, 0)),
                     pl.BlockSpec((1, tail_dim), lambda i: (0, 0))]
    fn = pl.pallas_call(
        _make_resblock_kernel(has_fc3, final_nl, has_tail),
        out_shape=jax.ShapeDtypeStruct((M, out_dim), jnp.float32),
        grid_spec=pltpu.PrefetchScalarGridSpec(
            num_scalar_prefetch=0,
            grid=(1,),
            in_specs=in_specs,
            out_specs=pl.BlockSpec((M, out_dim), lambda i: (0, 0))),
        compiler_params=pltpu.CompilerParams(
            dimension_semantics=("arbitrary",)),
    )
    return jax.jit(fn)


def pallas_resblock(x, p, final_nl=True, tail=None):
    M, Fin = x.shape
    H = p["fc1"]["w"].shape[1]
    Fout = p["fc2"]["w"].shape[1]
    has_fc3 = "fc3" in p
    tail_dim = tail["w"].shape[1] if tail is not None else 0
    args = [x.astype(jnp.float32), p["fc1"]["w"], p["fc1"]["b"],
            p["fc2"]["w"], p["fc2"]["b"]]
    if has_fc3:
        args += [p["fc3"]["w"], p["fc3"]["b"]]
    if tail is not None:
        args += [tail["w"], tail["b"]]
    return _resblock_call(M, Fin, H, Fout, tail_dim, has_fc3, final_nl)(*args)


# ----------------------------------------------------------------------------
# Fused transformer stack: the whole 4-layer encoder (or decoder + output head)
# is ONE pallas_call; activation carried in VMEM scratch across grid steps.
# ----------------------------------------------------------------------------

_LN_EPS = 1e-5
_BN_EPS = 1e-5
NHEAD = 8
DIM_FF = 256
NUM_TRANSFORMER_LAYERS = 4
NUM_PARTS = 16


def _make_transformer_stack_kernel(S, D, nhead, s_valid, with_head):
    dh = D // nhead

    def ln(x, g, b):
        mu = jnp.mean(x, axis=-1, keepdims=True)
        var = jnp.mean(jnp.square(x - mu), axis=-1, keepdims=True)
        return (x - mu) * jax.lax.rsqrt(var + _LN_EPS) * g + b

    def kernel(*args):
        if with_head:
            (x_ref, win, bin_, wout, bout, g1, be1, wf1, bf1, wf2, bf2,
             g2, be2, wh, bh, o_ref, x_sc) = args
        else:
            (x_ref, win, bin_, wout, bout, g1, be1, wf1, bf1, wf2, bf2,
             g2, be2, o_ref, x_sc) = args
        l = pl.program_id(1)

        @pl.when(l == 0)
        def _():
            x_sc[...] = x_ref[0]

        x = x_sc[...]                                      # (S, D) f32
        xb = x.astype(jnp.bfloat16)

        # ---- self-attention (scale already folded into in_proj q weights) ----
        qkv = jnp.dot(xb, win[0], preferred_element_type=jnp.float32) + bin_[0]
        q = qkv[:, :D].astype(jnp.bfloat16)
        k = qkv[:, D:2 * D].astype(jnp.bfloat16)
        v = qkv[:, 2 * D:].astype(jnp.bfloat16)

        head_of_lane = jax.lax.broadcasted_iota(jnp.int32, (S, D), 1) // dh
        kst = jnp.concatenate(
            [jnp.where(head_of_lane == h, k, jnp.zeros_like(k))
             for h in range(nhead)], axis=0)               # (nhead*S, D) bf16
        vst = jnp.concatenate(
            [jnp.where(head_of_lane == h, v, jnp.zeros_like(v))
             for h in range(nhead)], axis=0)               # (nhead*S, D) bf16

        # all head scores in one wide bf16 matmul: (S, D) x (nhead*S, D)^T
        s_all = jax.lax.dot_general(q, kst, (((1,), (1,)), ((), ())),
                                    preferred_element_type=jnp.float32)
        kpad = jax.lax.broadcasted_iota(jnp.int32, (S, S), 1) >= s_valid
        probs = []
        for h in range(nhead):                              # lane-aligned slices
            sh = s_all[:, h * S:(h + 1) * S]
            sh = jnp.where(kpad, -1e30, sh)
            m = jnp.max(sh, axis=-1, keepdims=True)
            e = jnp.exp(sh - m)
            e = e * pl.reciprocal(jnp.sum(e, axis=-1, keepdims=True), approx=True)
            probs.append(e.astype(jnp.bfloat16))
        p_all = jnp.concatenate(probs, axis=1)              # (S, nhead*S) bf16
        attn = jnp.dot(p_all, vst, preferred_element_type=jnp.float32)  # (S, D)
        attn = jnp.dot(attn.astype(jnp.bfloat16), wout[0],
                       preferred_element_type=jnp.float32) + bout[0]

        x = ln(x + attn, g1[0], be1[0])

        # ---- feed-forward ----
        h1 = jnp.dot(x.astype(jnp.bfloat16), wf1[0],
                     preferred_element_type=jnp.float32) + bf1[0]
        h1 = jnp.maximum(h1, 0.0)
        h2 = jnp.dot(h1.astype(jnp.bfloat16), wf2[0],
                     preferred_element_type=jnp.float32) + bf2[0]
        x = ln(x + h2, g2[0], be2[0])
        x_sc[...] = x

        @pl.when(l == pl.num_programs(1) - 1)
        def _():
            if with_head:
                o_ref[0] = (jnp.dot(x.astype(jnp.bfloat16), wh[0],
                                    preferred_element_type=jnp.float32)
                            + bh[0]).astype(o_ref.dtype)
            else:
                o_ref[0] = x.astype(o_ref.dtype)

    return kernel


@functools.lru_cache(maxsize=None)
def _transformer_stack_call(B, S, D, L, nhead, ff, s_valid, with_head, head_dim):
    out_dim = head_dim if with_head else D
    in_specs = [
        pl.BlockSpec((1, S, D), lambda b, l: (b, 0, 0)),
        pl.BlockSpec((1, D, 3 * D), lambda b, l: (l, 0, 0)),
        pl.BlockSpec((1, 1, 3 * D), lambda b, l: (l, 0, 0)),
        pl.BlockSpec((1, D, D), lambda b, l: (l, 0, 0)),
        pl.BlockSpec((1, 1, D), lambda b, l: (l, 0, 0)),
        pl.BlockSpec((1, 1, D), lambda b, l: (l, 0, 0)),
        pl.BlockSpec((1, 1, D), lambda b, l: (l, 0, 0)),
        pl.BlockSpec((1, D, ff), lambda b, l: (l, 0, 0)),
        pl.BlockSpec((1, 1, ff), lambda b, l: (l, 0, 0)),
        pl.BlockSpec((1, ff, D), lambda b, l: (l, 0, 0)),
        pl.BlockSpec((1, 1, D), lambda b, l: (l, 0, 0)),
        pl.BlockSpec((1, 1, D), lambda b, l: (l, 0, 0)),
        pl.BlockSpec((1, 1, D), lambda b, l: (l, 0, 0)),
    ]
    if with_head:
        in_specs += [pl.BlockSpec((1, D, head_dim), lambda b, l: (0, 0, 0)),
                     pl.BlockSpec((1, 1, head_dim), lambda b, l: (0, 0, 0))]
    fn = pl.pallas_call(
        _make_transformer_stack_kernel(S, D, nhead, s_valid, with_head),
        out_shape=jax.ShapeDtypeStruct((B, S, out_dim), jnp.float32),
        grid_spec=pltpu.PrefetchScalarGridSpec(
            num_scalar_prefetch=0,
            grid=(B, L),
            in_specs=in_specs,
            out_specs=pl.BlockSpec((1, S, out_dim), lambda b, l: (b, 0, 0)),
            scratch_shapes=[pltpu.VMEM((S, D), jnp.float32)]),
        compiler_params=pltpu.CompilerParams(
            dimension_semantics=("parallel", "arbitrary")),
    )
    return jax.jit(fn)


def pallas_transformer_stack(x, stack, nhead, s_valid, head=None):
    B, S, D = x.shape
    L = stack["w_in"].shape[0]
    FF = stack["w_ff1"].shape[-1]
    with_head = head is not None
    head_dim = int(head["w"].shape[-1]) if with_head else 0
    args = [x.astype(jnp.float32),
            stack["w_in"], stack["b_in"], stack["w_out"], stack["b_out"],
            stack["ln1_g"], stack["ln1_b"],
            stack["w_ff1"], stack["b_ff1"], stack["w_ff2"], stack["b_ff2"],
            stack["ln2_g"], stack["ln2_b"]]
    if with_head:
        args += [head["w"], head["b"]]
    return _transformer_stack_call(B, S, D, L, nhead, FF, s_valid,
                                   with_head, head_dim)(*args)


# ----------------------------------------------------------------------------
# Farthest-point sampling (both SA levels) in one Pallas kernel
# ----------------------------------------------------------------------------

def _make_fps_kernel(np1, np2, N):
    # TODO(synk): torch seeds FPS with torch.randint; we deterministically start
    # from point index 0.
    def fps(pts, npoint, n):
        lane1 = jax.lax.broadcasted_iota(jnp.int32, (1, n), 1)
        lane3 = jax.lax.broadcasted_iota(jnp.int32, (3, n), 1)
        out_lane = jax.lax.broadcasted_iota(jnp.int32, (3, npoint), 1)

        def body(i, state):
            dist, farthest, out = state
            c = jnp.sum(jnp.where(lane3 == farthest, pts, 0.0),
                        axis=1, keepdims=True)                    # (3, 1)
            out = jnp.where(out_lane == i, c, out)
            d = jnp.sum(jnp.square(pts - c), axis=0, keepdims=True)  # (1, n)
            dist = jnp.minimum(dist, d)
            m = jnp.max(dist)
            farthest = jnp.min(jnp.where(dist == m, lane1, n)).astype(jnp.int32)
            return dist, farthest, out

        dist0 = jnp.full((1, n), 1e10, jnp.float32)
        out0 = jnp.zeros((3, npoint), jnp.float32)
        _, _, out = jax.lax.fori_loop(0, npoint, body,
                                      (dist0, jnp.int32(0), out0))
        return out

    def kernel(xyz_ref, l1_ref, l2_ref):
        pts = xyz_ref[0]                      # (3, N) f32, resident in VMEM
        l1 = fps(pts, np1, N)                 # (3, np1)
        l1_ref[0] = l1
        l2_ref[0] = fps(l1, np2, np1)         # (3, np2)

    return kernel


@functools.lru_cache(maxsize=None)
def _fps_call(B, N, np1, np2):
    fn = pl.pallas_call(
        _make_fps_kernel(np1, np2, N),
        out_shape=(jax.ShapeDtypeStruct((B, 3, np1), jnp.float32),
                   jax.ShapeDtypeStruct((B, 3, np2), jnp.float32)),
        grid_spec=pltpu.PrefetchScalarGridSpec(
            num_scalar_prefetch=0,
            grid=(B,),
            in_specs=[pl.BlockSpec((1, 3, N), lambda b: (b, 0, 0))],
            out_specs=(pl.BlockSpec((1, 3, np1), lambda b: (b, 0, 0)),
                       pl.BlockSpec((1, 3, np2), lambda b: (b, 0, 0)))),
        compiler_params=pltpu.CompilerParams(
            dimension_semantics=("parallel",)),
    )
    return jax.jit(fn)


# ----------------------------------------------------------------------------
# Parameter initialization (prepared: bf16 weights, BN folded, merged heads)
# ----------------------------------------------------------------------------

def _prep_linear(w, b):
    return {"w": jnp.asarray(w, jnp.bfloat16),
            "b": jnp.asarray(b, jnp.float32).reshape(1, -1)}


class Init:
    def __init__(self, key):
        self._key = key

    def _next(self):
        self._key, sub = jax.random.split(self._key)
        return sub

    def normal(self, shape, scale=0.02):
        return (scale * jax.random.normal(self._next(), shape)).astype(jnp.float32)

    def _raw_linear(self, fan_in, fan_out):
        w = self.normal((fan_in, fan_out), fan_in ** -0.5)
        b = self.normal((fan_out,), 0.01)
        return w, b

    def linear(self, fan_in, fan_out):
        return _prep_linear(*self._raw_linear(fan_in, fan_out))

    def linear_bn(self, fan_in, fan_out):
        # eval-mode BatchNorm (mean=0, var=1) folded into the linear at init
        w, b = self._raw_linear(fan_in, fan_out)
        gamma = 1.0 + self.normal((fan_out,), 0.1)
        beta = self.normal((fan_out,), 0.1)
        scale = gamma / jnp.sqrt(1.0 + _BN_EPS)
        return _prep_linear(w * scale[None, :], b * scale + beta)

    def linear_merged(self, fan_in, fan_outs):
        ws, bs = [], []
        for fo in fan_outs:
            w, b = self._raw_linear(fan_in, fo)
            ws.append(w)
            bs.append(b)
        return _prep_linear(jnp.concatenate(ws, axis=1),
                            jnp.concatenate(bs, axis=0))


def init_resblock(init, Fin, Fout, n_neurons=256):
    p = {"fc1": init.linear_bn(Fin, n_neurons),
         "fc2": init.linear_bn(n_neurons, Fout)}
    if Fin != Fout:
        p["fc3"] = init.linear(Fin, Fout)
    return p


def init_transformer_stack(init, d_model, num_layers, nhead, dim_ff):
    dh = d_model // nhead
    scale = float(dh) ** -0.5
    acc = {k: [] for k in ("w_in", "b_in", "w_out", "b_out", "ln1_g", "ln1_b",
                           "w_ff1", "b_ff1", "w_ff2", "b_ff2", "ln2_g", "ln2_b")}
    for _ in range(num_layers):
        wq, bq = init._raw_linear(d_model, d_model)
        wk, bk = init._raw_linear(d_model, d_model)
        wv, bv = init._raw_linear(d_model, d_model)
        # 1/sqrt(dh) folded into the q projection
        acc["w_in"].append(jnp.concatenate([wq * scale, wk, wv], axis=1))
        acc["b_in"].append(jnp.concatenate([bq * scale, bk, bv], axis=0))
        wo, bo = init._raw_linear(d_model, d_model)
        acc["w_out"].append(wo)
        acc["b_out"].append(bo)
        acc["ln1_g"].append(jnp.ones((d_model,), jnp.float32))
        acc["ln1_b"].append(jnp.zeros((d_model,), jnp.float32))
        w1, b1 = init._raw_linear(d_model, dim_ff)
        w2, b2 = init._raw_linear(dim_ff, d_model)
        acc["w_ff1"].append(w1)
        acc["b_ff1"].append(b1)
        acc["w_ff2"].append(w2)
        acc["b_ff2"].append(b2)
        acc["ln2_g"].append(jnp.ones((d_model,), jnp.float32))
        acc["ln2_b"].append(jnp.zeros((d_model,), jnp.float32))

    def stack_w(lst):
        return jnp.stack([jnp.asarray(a, jnp.bfloat16) for a in lst], axis=0)

    def stack_v(lst):
        return jnp.stack([jnp.asarray(a, jnp.float32).reshape(1, -1) for a in lst],
                         axis=0)

    return {"w_in": stack_w(acc["w_in"]), "b_in": stack_v(acc["b_in"]),
            "w_out": stack_w(acc["w_out"]), "b_out": stack_v(acc["b_out"]),
            "ln1_g": stack_v(acc["ln1_g"]), "ln1_b": stack_v(acc["ln1_b"]),
            "w_ff1": stack_w(acc["w_ff1"]), "b_ff1": stack_v(acc["b_ff1"]),
            "w_ff2": stack_w(acc["w_ff2"]), "b_ff2": stack_v(acc["b_ff2"]),
            "ln2_g": stack_v(acc["ln2_g"]), "ln2_b": stack_v(acc["ln2_b"])}


def init_pointnet_encoder(init, hc, in_feature):
    # NOTE: conv input channels follow the actual grouped feature size (D + 3).
    return {
        "sa1": (init.linear_bn(in_feature + 3, hc), init.linear_bn(hc, hc * 2)),
        "sa2": (init.linear_bn(hc * 2 + 3, hc * 2), init.linear_bn(hc * 2, hc * 4)),
        "sa3": (init.linear_bn(hc * 4 + 3, hc * 4), init.linear_bn(hc * 4, hc * 8)),
    }


def init_contactnet(init, latentD, hc, object_feature):
    return {
        "enc_pointnet": init_pointnet_encoder(init, hc, object_feature + 1),
        "dec_fc4": init.linear_bn(hc * 8 + latentD, hc * 8),
        "dec_fp3": (init.linear_bn(hc * 8 + hc * 4, hc * 8),
                    init.linear_bn(hc * 8, hc * 4)),
        "dec_fp2": (init.linear_bn(hc * 4 + hc * 2, hc * 4),
                    init.linear_bn(hc * 4, hc * 2)),
        # fp1 (two layers) + dec_conv1(+BN,relu) + dec_conv2(sigmoid) fused chain
        # (actual runtime channels: hc*2 interp + 3 xyz + object_feature)
        "dec_fp1_conv": (init.linear_bn(hc * 2 + 3 + object_feature, hc * 2),
                         init.linear_bn(hc * 2, hc * 2),
                         init.linear_bn(hc * 2, hc * 2),
                         init.linear(hc * 2, 1)),
    }


def _seq_pad(n_markers):
    return max(128, _round_up(n_markers, 128))


def init_markernet(init, cfg):
    d_model = cfg["transformer_embed_dimension"]
    n_markers = cfg["in_feature"] // 3
    n_neurons = cfg["n_markers"]          # MarkerNet(n_neurons=cfg.n_markers, ...)
    in_cond = cfg["pointnet_hc"] * 8
    latentD = cfg["latentD"]
    obj_cond = 1 if cfg["cond_object_height"] else 0
    seq_pad = _seq_pad(n_markers)
    # TODO(synk): get_segmentation()/create_marker_to_part() unavailable;
    # synthetic deterministic segmentation: marker i -> part i % NUM_PARTS.
    marker_to_part = jnp.arange(n_markers, dtype=jnp.int32) % NUM_PARTS
    part_embedding = init.normal((NUM_PARTS, d_model), 0.02)
    pe = part_embedding[marker_to_part]
    pe_pad = jnp.pad(pe, ((0, seq_pad - n_markers), (0, 0)))

    # output_proj_xyz (d->3) and output_proj_p (d->1) merged and fused as a head
    # executed on the last grid step of the decoder transformer stack.
    head = init.linear_merged(d_model, (3, 1))
    output_proj = {"w": head["w"][None], "b": head["b"][None]}

    return {
        "part_embedding_pad": pe_pad,
        "input_proj": init.linear(3 + obj_cond, d_model),
        "input_proj_decoder": init.linear(d_model + in_cond + obj_cond, d_model),
        "encoder_stack": init_transformer_stack(init, d_model,
                                                NUM_TRANSFORMER_LAYERS, NHEAD, DIM_FF),
        "decoder_stack": init_transformer_stack(init, d_model,
                                                NUM_TRANSFORMER_LAYERS, NHEAD, DIM_FF),
        "fc_out": init.linear(n_markers * (d_model + 1), n_neurons),
        "enc_rb1": init_resblock(init, n_neurons, n_neurons),
        "enc_rb2": init_resblock(init, n_neurons, n_neurons),
        "z_to_seq": init.linear(latentD, n_markers * d_model),
        "output_proj": output_proj,
    }


def init_fullbody_grasp_net(key, cfg):
    init = Init(key)
    return {
        "marker_net": init_markernet(init, cfg),
        "contact_net": init_contactnet(init, cfg["latentD"], cfg["pointnet_hc"],
                                       cfg["obj_feature"]),
        "pointnet": init_pointnet_encoder(init, cfg["pointnet_hc"],
                                          cfg["obj_feature"]),
        "enc_fusion": init_resblock(init, cfg["n_markers"] + cfg["pointnet_hc"] * 8,
                                    cfg["n_neurons"]),
        # enc_mu / enc_var merged and fused as the tail of the enc_fusion kernel
        "enc_muvar": init.linear_merged(cfg["n_neurons"],
                                        (cfg["latentD"], cfg["latentD"])),
    }


# ----------------------------------------------------------------------------
# PointNet++ geometry (gather / ball-query glue in plain JAX, FPS in Pallas)
# ----------------------------------------------------------------------------

def square_distance(src, dst):
    return (jnp.sum(src ** 2, -1)[:, :, None]
            + jnp.sum(dst ** 2, -1)[:, None, :]
            - 2.0 * jnp.einsum("bnc,bmc->bnm", src, dst))


def index_points(points, idx):
    B = points.shape[0]
    batch = jnp.arange(B).reshape((B,) + (1,) * (idx.ndim - 1))
    return points[batch, idx]


def query_ball_point(radius, nsample, xyz, new_xyz):
    # TODO(synk): when no point is inside the radius this falls back to the last
    # point via index clamping rather than torch's group_first behavior.
    B, N, _ = xyz.shape
    S = new_xyz.shape[1]
    sqr = square_distance(new_xyz, xyz)
    idx = jnp.broadcast_to(jnp.arange(N, dtype=jnp.int32)[None, None, :], (B, S, N))
    idx = jnp.where(sqr > radius ** 2, N, idx)
    idx = jnp.sort(idx, axis=-1)[:, :, :nsample]
    first = idx[:, :, :1]
    return jnp.where(idx == N, first, idx)


def compute_pointnet_geometry(verts_b3n, xyz):
    """FPS (Pallas) + ball-query geometry shared by both PointNet encoders."""
    B, _, N = verts_b3n.shape
    l1_t, l2_t = _fps_call(B, N, 256, 128)(verts_b3n.astype(jnp.float32))
    l1_xyz = jnp.transpose(l1_t, (0, 2, 1))                      # (B, 256, 3)
    l2_xyz = jnp.transpose(l2_t, (0, 2, 1))                      # (B, 128, 3)
    idx1 = query_ball_point(0.2, 32, xyz, l1_xyz)
    g1 = (index_points(xyz, idx1) - l1_xyz[:, :, None, :]).astype(jnp.float32)
    idx2 = query_ball_point(0.25, 64, l1_xyz, l2_xyz)
    g2 = (index_points(l1_xyz, idx2) - l2_xyz[:, :, None, :]).astype(jnp.float32)
    return {"l1_xyz": l1_xyz, "idx1": idx1, "g1": g1,
            "l2_xyz": l2_xyz, "idx2": idx2, "g2": g2}


def sa_apply(grouped_xyz, idx, points, layers):
    if points is not None:
        grouped = jnp.concatenate(
            [grouped_xyz, index_points(points, idx).astype(jnp.float32)], axis=-1)
    else:
        grouped = grouped_xyz
    B, S, K, C = grouped.shape
    x = pallas_mlp_chain(grouped.reshape(B * S * K, C), list(layers),
                         ("relu", "relu"), jnp.bfloat16)
    return jnp.max(x.reshape(B, S, K, -1), axis=2)                # (B, S, C2)


def sa_group_all_apply(xyz, points, layers):
    B, N, _ = xyz.shape
    grouped = xyz if points is None else jnp.concatenate(
        [xyz, points.astype(jnp.float32)], axis=-1)
    x = pallas_mlp_chain(grouped.reshape(B * N, grouped.shape[-1]), list(layers),
                         ("relu", "relu"), jnp.float32)
    return jnp.max(x.reshape(B, N, -1), axis=1)                   # (B, C2)


def pointnet_encoder_shared(geom, points, p):
    """Channel-last PointNet encoder reusing precomputed sampling geometry."""
    l1_points = sa_apply(geom["g1"], geom["idx1"], points, p["sa1"])
    l2_points = sa_apply(geom["g2"], geom["idx2"], l1_points, p["sa2"])
    x = sa_group_all_apply(geom["l2_xyz"], l2_points, p["sa3"])   # (B, hc*8)
    B = points.shape[0]
    l3_xyz = jnp.zeros((B, 1, 3), jnp.float32)
    return (geom["l1_xyz"], l1_points, geom["l2_xyz"], l2_points, l3_xyz, x)


def fp_interpolate(xyz1, xyz2, points1, points2):
    B, N, _ = xyz1.shape
    S = xyz2.shape[1]
    if S == 1:
        interp = jnp.broadcast_to(points2.astype(jnp.float32),
                                  (B, N, points2.shape[-1]))
    else:
        dists = square_distance(xyz1, xyz2)
        neg_d, idx = jax.lax.top_k(-dists, 3)              # 3 nearest neighbours
        recip = 1.0 / (-neg_d + 1e-8)
        weight = recip / jnp.sum(recip, axis=-1, keepdims=True)
        interp = jnp.sum(index_points(points2, idx).astype(jnp.float32)
                         * weight[..., None], axis=2)
    if points1 is None:
        return interp
    return jnp.concatenate([points1.astype(jnp.float32), interp], axis=-1)


def feature_propagation(xyz1, xyz2, points1, points2, layers,
                        acts=("relu", "relu"), out_dtype=jnp.bfloat16):
    new_points = fp_interpolate(xyz1, xyz2, points1, points2)
    B, N, C = new_points.shape
    x = pallas_mlp_chain(new_points.reshape(B * N, C), list(layers), acts, out_dtype)
    return x.reshape(B, N, -1)


# ----------------------------------------------------------------------------
# ContactNet decoder
# ----------------------------------------------------------------------------

def contactnet_dec(p, z, cond_object, xyz, feat):
    l1_xyz, l1_points, l2_xyz, l2_points, l3_xyz, l3_points = cond_object
    l3 = jnp.concatenate([l3_points, z], axis=1)
    l3 = pallas_linear(l3, p["dec_fc4"], activation="relu")       # dropout: identity
    l3 = l3[:, None, :]                                           # (B, 1, hc*8)
    l2p = feature_propagation(l2_xyz, l3_xyz, l2_points, l3, p["dec_fp3"])
    l1p = feature_propagation(l1_xyz, l2_xyz, l1_points, l2p, p["dec_fp2"])
    l0_in = jnp.concatenate([xyz, feat], axis=-1)
    # dec_fp1 + dec_conv1(relu) + dec_conv2(sigmoid) in ONE fused chain kernel
    l0p = feature_propagation(xyz, l1_xyz, l0_in, l1p, p["dec_fp1_conv"],
                              acts=("relu", "relu", "relu", "sigmoid"),
                              out_dtype=jnp.float32)
    return jnp.transpose(l0p, (0, 2, 1))                          # (B, 1, N)


# ----------------------------------------------------------------------------
# MarkerNet
# ----------------------------------------------------------------------------

def markernet_enc(p, cfg, markers, contacts_markers, transf_transl,
                  marker_object_distance):
    n_markers = cfg["in_feature"] // 3
    S = _seq_pad(n_markers)
    bs = markers.shape[0]
    m = markers.reshape(bs, n_markers, 3).astype(jnp.float32)
    if cfg["cond_object_height"]:
        height = jnp.broadcast_to(transf_transl[:, -1][:, None, None],
                                  (bs, n_markers, 1)).astype(jnp.float32)
        m = jnp.concatenate([m, height], axis=-1)
    m = jnp.pad(m, ((0, 0), (0, S - n_markers), (0, 0)))
    emb = pallas_linear(m, p["input_proj"])                       # (B, S, d)
    emb = emb + p["part_embedding_pad"][None]
    # torch's (seq, batch, d) permute is layout-only; attention math is identical.
    x = pallas_transformer_stack(emb, p["encoder_stack"], NHEAD, s_valid=n_markers)
    x = x[:, :n_markers]
    weighted = x * marker_object_distance[:, :, None].astype(jnp.float32)
    x0 = jnp.concatenate([weighted, contacts_markers.astype(jnp.float32)],
                         axis=-1).reshape(bs, -1)
    X = pallas_linear(x0, p["fc_out"], activation="relu")
    X = pallas_resblock(X, p["enc_rb1"])
    X = pallas_resblock(X, p["enc_rb2"])
    return X


def markernet_dec(p, cfg, Z, object_cond_vec, transf_transl):
    d_model = cfg["transformer_embed_dimension"]
    n_markers = cfg["in_feature"] // 3
    S = _seq_pad(n_markers)
    bs = Z.shape[0]
    z_seq = pallas_linear(Z, p["z_to_seq"]).reshape(bs, n_markers, d_model)
    z_seq = jnp.pad(z_seq, ((0, 0), (0, S - n_markers), (0, 0)))
    z_seq = z_seq + p["part_embedding_pad"][None]
    oc = jnp.broadcast_to(object_cond_vec[:, None, :],
                          (bs, S, object_cond_vec.shape[-1]))
    z_seq = jnp.concatenate([z_seq, oc], axis=2)
    if cfg["cond_object_height"]:
        height = jnp.broadcast_to(transf_transl[:, -1][:, None, None],
                                  (bs, S, 1)).astype(jnp.float32)
        z_seq = jnp.concatenate([z_seq, height], axis=2)
    z_seq = pallas_linear(z_seq, p["input_proj_decoder"])
    # decoder stack + merged output_proj head fused in one pallas_call
    out = pallas_transformer_stack(z_seq, p["decoder_stack"], NHEAD,
                                   s_valid=n_markers, head=p["output_proj"])
    out = out[:, :n_markers]                                      # (B, n_markers, 4)
    xyz_pred = out[..., :3]
    p_pred = jax.nn.sigmoid(out[..., 3])
    return xyz_pred.reshape(bs, -1), p_pred


# ----------------------------------------------------------------------------
# FullBodyGraspNet forward
# ----------------------------------------------------------------------------

def fullbody_grasp_net_forward(params, cfg, verts_object, feat_object,
                               contacts_object, markers, contacts_markers,
                               transf_transl, marker_object_distance, rng):
    latentD = cfg["latentD"]

    verts_b3n = verts_object[:, :3, :].astype(jnp.float32)
    xyz = jnp.transpose(verts_b3n, (0, 2, 1))
    feat = jnp.transpose(feat_object, (0, 2, 1)).astype(jnp.float32)
    contacts = jnp.transpose(contacts_object, (0, 2, 1)).astype(jnp.float32)

    # FPS (Pallas) + ball-query geometry computed once, shared by both encoders.
    geom = compute_pointnet_geometry(verts_b3n, xyz)

    object_cond = pointnet_encoder_shared(geom, feat, params["pointnet"])
    contact_feat = pointnet_encoder_shared(
        geom, jnp.concatenate([feat, contacts], axis=-1),
        params["contact_net"]["enc_pointnet"])[-1]

    # encode -> Normal(mean, softplus(var))
    marker_feat = markernet_enc(params["marker_net"], cfg, markers,
                                contacts_markers, transf_transl,
                                marker_object_distance)
    X = jnp.concatenate([marker_feat, contact_feat], axis=-1)
    # enc_fusion ResBlock + merged enc_mu/enc_var projection in ONE kernel
    mv = pallas_resblock(X, params["enc_fusion"], final_nl=True,
                         tail=params["enc_muvar"])
    mean = mv[:, :latentD]
    std = jax.nn.softplus(mv[:, latentD:])

    # rsample (reparameterized)
    z_s = mean + std * jax.random.normal(rng, mean.shape, jnp.float32)

    # decode
    markers_xyz_pred, markers_p_pred = markernet_dec(params["marker_net"], cfg,
                                                     z_s, object_cond[-1],
                                                     transf_transl)
    object_p_pred = contactnet_dec(params["contact_net"], z_s, object_cond,
                                   xyz, feat)
    bs = z_s.shape[0]
    return {
        "markers": markers_xyz_pred.reshape(bs, -1, 3),
        "contacts_markers": markers_p_pred,
        "contacts_object": object_p_pred,
        "object_code": object_cond[-1],
        "mean": mean,
        "std": std,
    }


if __name__ == "__main__":
    cfg = {
        "latentD": 16,
        "pointnet_hc": 16,
        "obj_feature": 6,
        "n_markers": 128,                  # cfg.n_markers (MarkerNet hidden width)
        "n_neurons": 128,
        "cond_object_height": True,
        "transformer_embed_dimension": 32,
        "data_representation": "joints",   # -> in_feature = 127 * 3
    }
    in_feature_list = {"joints": 127 * 3, "markers_143": 143 * 3,
                       "markers_214": 214 * 3, "markers_593": 593 * 3}
    cfg["in_feature"] = in_feature_list[cfg["data_representation"]]
    n_markers = cfg["in_feature"] // 3

    B, N = 2, 512
    key = jax.random.PRNGKey(0)
    k_param, k_data, k_sample = jax.random.split(key, 3)
    params = init_fullbody_grasp_net(k_param, cfg)

    ks = jax.random.split(k_data, 7)
    verts_object = jax.random.normal(ks[0], (B, 3, N), jnp.float32)
    feat_object = jax.random.normal(ks[1], (B, cfg["obj_feature"], N), jnp.float32)
    contacts_object = jax.nn.sigmoid(jax.random.normal(ks[2], (B, 1, N), jnp.float32))
    markers = jax.random.normal(ks[3], (B, n_markers, 3), jnp.float32)
    contacts_markers = jax.nn.sigmoid(
        jax.random.normal(ks[4], (B, n_markers, 1), jnp.float32))
    transf_transl = jax.random.normal(ks[5], (B, 3), jnp.float32)
    marker_object_distance = jnp.abs(
        jax.random.normal(ks[6], (B, n_markers), jnp.float32))

    fwd = jax.jit(lambda p, *args: fullbody_grasp_net_forward(p, cfg, *args))
    results = fwd(params, verts_object, feat_object, contacts_object, markers,
                  contacts_markers, transf_transl, marker_object_distance, k_sample)
    results = jax.block_until_ready(results)

    assert results["markers"].shape == (B, n_markers, 3)
    assert results["contacts_markers"].shape == (B, n_markers)
    assert results["contacts_object"].shape == (B, 1, N)
    assert results["object_code"].shape == (B, cfg["pointnet_hc"] * 8)
    assert results["mean"].shape == (B, cfg["latentD"])
    assert results["std"].shape == (B, cfg["latentD"])
    print("KERNEL_OK")
</pallas_src>

<mosaic_0001>
module attributes {stable_mosaic.version = 11 : i64} {
  func.func @kernel(%arg0: i32, %arg1: memref<1x3x512xf32, #tpu.memory_space<vmem>>, %arg2: memref<1x3x256xf32, #tpu.memory_space<vmem>>, %arg3: memref<1x3x128xf32, #tpu.memory_space<vmem>>) attributes {dimension_semantics = [#tpu.dimension_semantics<parallel>], iteration_bounds = array<i64: 2>, scalar_prefetch = 0 : i64, scratch_operands = 0 : i64, tpu.core_type = #tpu.core_type<tc>, window_params = [{transform_indices = @transform_0, window_bounds = array<i64: 1, 3, 512>}, {transform_indices = @transform_1, window_bounds = array<i64: 1, 3, 256>}, {transform_indices = @transform_2, window_bounds = array<i64: 1, 3, 128>}]} {
    %c0 = arith.constant 0 : index
    %c0_0 = arith.constant 0 : index
    %c0_1 = arith.constant 0 : index
    %0 = vector.load %arg1[%c0, %c0_0, %c0_1] : memref<1x3x512xf32, #tpu.memory_space<vmem>>, vector<1x3x512xf32>
    %1 = vector.shape_cast %0 : vector<1x3x512xf32> to vector<3x512xf32>
    %2 = tpu.iota {dimensions = array<i32: 1>} : vector<1x512xi32>
    %3 = tpu.iota {dimensions = array<i32: 1>} : vector<3x512xi32>
    %4 = tpu.iota {dimensions = array<i32: 1>} : vector<3x256xi32>
    %cst = arith.constant 1.000000e+10 : f32
    %5 = vector.broadcast %cst : f32 to vector<1x512xf32>
    %cst_2 = arith.constant 0.000000e+00 : f32
    %6 = vector.broadcast %cst_2 : f32 to vector<3x256xf32>
    %c0_i32 = arith.constant 0 : i32
    %c0_i32_3 = arith.constant 0 : i32
    %c256_i32 = arith.constant 256 : i32
    %7 = arith.addi %c0_i32_3, %c256_i32 : i32
    %c1_i32 = arith.constant 1 : i32
    %8:3 = scf.for %arg4 = %c0_i32_3 to %7 step %c1_i32 iter_args(%arg5 = %5, %arg6 = %c0_i32, %arg7 = %6) -> (vector<1x512xf32>, i32, vector<3x256xf32>)  : i32 {
      %22 = vector.broadcast %arg6 : i32 to vector<3x512xi32>
      %23 = arith.cmpi eq, %3, %22 : vector<3x512xi32>
      %cst_17 = arith.constant 0.000000e+00 : f32
      %24 = vector.broadcast %cst_17 : f32 to vector<3x512xf32>
      %25 = arith.select %23, %1, %24 : vector<3x512xi1>, vector<3x512xf32>
      %cst_18 = arith.constant dense<0.000000e+00> : vector<3xf32>
      %26 = vector.multi_reduction <add>, %25, %cst_18 [1] : vector<3x512xf32> to vector<3xf32>
      %27 = vector.shape_cast %26 : vector<3xf32> to vector<3x1xf32>
      %28 = vector.broadcast %arg4 : i32 to vector<3x256xi32>
      %29 = arith.cmpi eq, %4, %28 : vector<3x256xi32>
      %30 = vector.shape_cast %27 : vector<3x1xf32> to vector<3x1xf32>
      %31 = vector.broadcast %30 : vector<3x1xf32> to vector<3x256xf32>
      %32 = arith.select %29, %31, %arg7 : vector<3x256xi1>, vector<3x256xf32>
      %33 = vector.broadcast %27 : vector<3x1xf32> to vector<3x512xf32>
      %34 = arith.subf %1, %33 : vector<3x512xf32>
      %35 = arith.mulf %34, %34 : vector<3x512xf32>
      %cst_19 = arith.constant dense<0.000000e+00> : vector<512xf32>
      %36 = vector.multi_reduction <add>, %35, %cst_19 [0] : vector<3x512xf32> to vector<512xf32>
      %37 = vector.shape_cast %36 : vector<512xf32> to vector<1x512xf32>
      %38 = arith.minimumf %arg5, %37 : vector<1x512xf32>
      %39 = vector.shape_cast %38 : vector<1x512xf32> to vector<1x1x512xf32>
      %cst_20 = arith.constant dense<0xFF800000> : vector<1xf32>
      %40 = vector.multi_reduction <maximumf>, %39, %cst_20 [1, 2] : vector<1x1x512xf32> to vector<1xf32>
      %41 = vector.shape_cast %40 : vector<1xf32> to vector<1x1x1xf32>
      %42 = vector.extract %41[0, 0, 0] : f32 from vector<1x1x1xf32>
      %43 = vector.broadcast %42 : f32 to vector<1x512xf32>
      %44 = arith.cmpf oeq, %38, %43 : vector<1x512xf32>
      %c512_i32 = arith.constant 512 : i32
      %45 = vector.broadcast %c512_i32 : i32 to vector<1x512xi32>
      %46 = arith.select %44, %2, %45 : vector<1x512xi1>, vector<1x512xi32>
      %47 = vector.shape_cast %46 : vector<1x512xi32> to vector<1x1x512xi32>
      %cst_21 = arith.constant dense<2147483647> : vector<1xi32>
      %48 = vector.multi_reduction <minsi>, %47, %cst_21 [1, 2] : vector<1x1x512xi32> to vector<1xi32>
      %49 = vector.shape_cast %48 : vector<1xi32> to vector<1x1x1xi32>
      %50 = vector.extract %49[0, 0, 0] : i32 from vector<1x1x1xi32>
      scf.yield %38, %50, %32 : vector<1x512xf32>, i32, vector<3x256xf32>
    }
    %c256_i32_4 = arith.constant 256 : i32
    %c0_5 = arith.constant 0 : index
    %c0_6 = arith.constant 0 : index
    %c0_7 = arith.constant 0 : index
    %9 = vector.load %arg2[%c0_5, %c0_6, %c0_7] : memref<1x3x256xf32, #tpu.memory_space<vmem>>, vector<1x3x256xf32>
    %10 = vector.shape_cast %9 : vector<1x3x256xf32> to vector<3x256xf32>
    %11 = vector.shape_cast %8#2 : vector<3x256xf32> to vector<1x3x256xf32>
    tpu.vector_store %arg2[%c0_5, %c0_6, %c0_7], %11 {strides = array<i32>} : memref<1x3x256xf32, #tpu.memory_space<vmem>>, vector<1x3x256xf32>,
    %12 = tpu.iota {dimensions = array<i32: 1>} : vector<1x256xi32>
    %13 = tpu.iota {dimensions = array<i32: 1>} : vector<3x256xi32>
    %14 = tpu.iota {dimensions = array<i32: 1>} : vector<3x128xi32>
    %cst_8 = arith.constant 1.000000e+10 : f32
    %15 = vector.broadcast %cst_8 : f32 to vector<1x256xf32>
    %cst_9 = arith.constant 0.000000e+00 : f32
    %16 = vector.broadcast %cst_9 : f32 to vector<3x128xf32>
    %c0_i32_10 = arith.constant 0 : i32
    %c0_i32_11 = arith.constant 0 : i32
    %c128_i32 = arith.constant 128 : i32
    %17 = arith.addi %c0_i32_11, %c128_i32 : i32
    %c1_i32_12 = arith.constant 1 : i32
    %18:3 = scf.for %arg4 = %c0_i32_11 to %17 step %c1_i32_12 iter_args(%arg5 = %15, %arg6 = %c0_i32_10, %arg7 = %16) -> (vector<1x256xf32>, i32, vector<3x128xf32>)  : i32 {
      %22 = vector.broadcast %arg6 : i32 to vector<3x256xi32>
      %23 = arith.cmpi eq, %13, %22 : vector<3x256xi32>
      %cst_17 = arith.constant 0.000000e+00 : f32
      %24 = vector.broadcast %cst_17 : f32 to vector<3x256xf32>
      %25 = arith.select %23, %8#2, %24 : vector<3x256xi1>, vector<3x256xf32>
      %cst_18 = arith.constant dense<0.000000e+00> : vector<3xf32>
      %26 = vector.multi_reduction <add>, %25, %cst_18 [1] : vector<3x256xf32> to vector<3xf32>
      %27 = vector.shape_cast %26 : vector<3xf32> to vector<3x1xf32>
      %28 = vector.broadcast %arg4 : i32 to vector<3x128xi32>
      %29 = arith.cmpi eq, %14, %28 : vector<3x128xi32>
      %30 = vector.shape_cast %27 : vector<3x1xf32> to vector<3x1xf32>
      %31 = vector.broadcast %30 : vector<3x1xf32> to vector<3x128xf32>
      %32 = arith.select %29, %31, %arg7 : vector<3x128xi1>, vector<3x128xf32>
      %33 = vector.broadcast %27 : vector<3x1xf32> to vector<3x256xf32>
      %34 = arith.subf %8#2, %33 : vector<3x256xf32>
      %35 = arith.mulf %34, %34 : vector<3x256xf32>
      %cst_19 = arith.constant dense<0.000000e+00> : vector<256xf32>
      %36 = vector.multi_reduction <add>, %35, %cst_19 [0] : vector<3x256xf32> to vector<256xf32>
      %37 = vector.shape_cast %36 : vector<256xf32> to vector<1x256xf32>
      %38 = arith.minimumf %arg5, %37 : vector<1x256xf32>
      %39 = vector.shape_cast %38 : vector<1x256xf32> to vector<1x1x256xf32>
      %cst_20 = arith.constant dense<0xFF800000> : vector<1xf32>
      %40 = vector.multi_reduction <maximumf>, %39, %cst_20 [1, 2] : vector<1x1x256xf32> to vector<1xf32>
      %41 = vector.shape_cast %40 : vector<1xf32> to vector<1x1x1xf32>
      %42 = vector.extract %41[0, 0, 0] : f32 from vector<1x1x1xf32>
      %43 = vector.broadcast %42 : f32 to vector<1x256xf32>
      %44 = arith.cmpf oeq, %38, %43 : vector<1x256xf32>
      %c256_i32_21 = arith.constant 256 : i32
      %45 = vector.broadcast %c256_i32_21 : i32 to vector<1x256xi32>
      %46 = arith.select %44, %12, %45 : vector<1x256xi1>, vector<1x256xi32>
      %47 = vector.shape_cast %46 : vector<1x256xi32> to vector<1x1x256xi32>
      %cst_22 = arith.constant dense<2147483647> : vector<1xi32>
      %48 = vector.multi_reduction <minsi>, %47, %cst_22 [1, 2] : vector<1x1x256xi32> to vector<1xi32>
      %49 = vector.shape_cast %48 : vector<1xi32> to vector<1x1x1xi32>
      %50 = vector.extract %49[0, 0, 0] : i32 from vector<1x1x1xi32>
      scf.yield %38, %50, %32 : vector<1x256xf32>, i32, vector<3x128xf32>
    }
    %c128_i32_13 = arith.constant 128 : i32
    %c0_14 = arith.constant 0 : index
    %c0_15 = arith.constant 0 : index
    %c0_16 = arith.constant 0 : index
    %19 = vector.load %arg3[%c0_14, %c0_15, %c0_16] : memref<1x3x128xf32, #tpu.memory_space<vmem>>, vector<1x3x128xf32>
    %20 = vector.shape_cast %19 : vector<1x3x128xf32> to vector<3x128xf32>
    %21 = vector.shape_cast %18#2 : vector<3x128xf32> to vector<1x3x128xf32>
    tpu.vector_store %arg3[%c0_14, %c0_15, %c0_16], %21 {strides = array<i32>} : memref<1x3x128xf32, #tpu.memory_space<vmem>>, vector<1x3x128xf32>,
    return
  }
  func.func @transform_0(%arg0: i32) -> (i32, i32, i32) {
    %c0_i32 = arith.constant 0 : i32
    %c0_i32_0 = arith.constant 0 : i32
    %c0_i32_1 = arith.constant 0 : i32
    return %arg0, %c0_i32, %c0_i32_0 : i32, i32, i32
  }
  func.func @transform_1(%arg0: i32) -> (i32, i32, i32) {
    %c0_i32 = arith.constant 0 : i32
    %c0_i32_0 = arith.constant 0 : i32
    %c0_i32_1 = arith.constant 0 : i32
    return %arg0, %c0_i32, %c0_i32_0 : i32, i32, i32
  }
  func.func @transform_2(%arg0: i32) -> (i32, i32, i32) {
    %c0_i32 = arith.constant 0 : i32
    %c0_i32_0 = arith.constant 0 : i32
    %c0_i32_1 = arith.constant 0 : i32
    return %arg0, %c0_i32, %c0_i32_0 : i32, i32, i32
  }
}

</mosaic_0001>

<bundles_post_ra>
// kernel: tpu_custom_call.1
= control target key start
LH: loop header
LB: loop body
LE: loop exit
PB: predicated region body
PF: predicated region fallthrough
CT: control target
= control target key end

     0   :  { %s760_s9 = smov 0   ;;  %s935_s0 = inlined_call_operand.vmem [shape: f32[2,3,512], index: 0, kind: input, shape index: {}]   ;;  %s936_s1 = inlined_call_operand.vmem [shape: f32[2,3,256], index: 1, kind: output, shape index: {0}]   ;;  %s937_s2 = inlined_call_operand.vmem [shape: f32[2,3,128], index: 2, kind: output, shape index: {1}]  }
   0x1 LB: > { %s497_s10 = sadd.s32 4294967295, %s690_s9   ;;  %p501_p0 = scmp.ge.s32.totalorder %s690_s9, 1  ;;  %s690_s9 = sphi %s760_s9, %s13_s9  }
   0x2   : > { %p115_p1 = scmp.lt.s32.totalorder %s690_s9, 3 }
   0x4   : > { %p116_p2 = pnand %p501_p0, %p115_p1 }
   0x5   : > { %p141_p3 = scmp.lt.s32.totalorder (!%p116_p2), %s497_s10, 1  ;;  %v157_v0 = vlaneseq (!%p116_p2)  ;;  %v797_v7 = vmov (!%p116_p2), 0.0   ;;  %v799_v8 = vmov (!%p116_p2), 0.0   ;;  %s801_s23 = smov (!%p116_p2), 0   ;;  %v803_v9 = vmov (!%p116_p2), 1e+10  }
   0x6   : > { %119 = sbr.rel (%p116_p2) target bundleno = 1450 (0x5aa), region = 24  ;;  %v805_v10 = vmov (!%p116_p2), 1e+10   ;;  %v807_v11 = vmov (!%p116_p2), 1e+10   ;;  %s811_s24 = smov (!%p116_p2), 0  }
   0x7   : > { %v769_v1 = vand.u32 (!%p116_p2), 127, %v157_v0  ;;  %v809_v12 = vmov (!%p116_p2), 1e+10  }
   0x9   : > { %v772_v2 = vadd.s32 (!%p116_p2), 128, %v769_v1  ;;  %v775_v3 = vadd.s32 (!%p116_p2), 256, %v769_v1  ;;  %v778_v4 = vadd.s32 (!%p116_p2), 384, %v769_v1 }
   0xd   : > { %s944_s10 = smov (!%p141_p3, %s497_s10), 1 }
   0xe   : > { %s509_s11 = sshll.u32 %s944_s10, 4  ;;  %s510_s12 = sshll.u32 %s944_s10, 3 }
   0xf   : > { %s145_s15 = scalar_lea.vmem %s935_s0, %s509_s11  ;;  %s786_s18 = scalar_lea.vmem %s936_s1, %s510_s12 }
  0x10   : > { %s506_s19 = sshll.u32 %s944_s10, 2  ;;  %v788_v5 = vld [vmem:[%s145_s15] sm:$0x77]  ;;  %v790_v6 = vld [vmem:[%s145_s15 + $0x8] sm:$0x77] }
  0x11   : > { %s795_s22 = scalar_lea.vmem %s937_s2, %s506_s19 }
  0x12 LB: >> { %v182_v13 = vcombine.high %v788_v5, %v788_v5  ;;  %v183_v14 = vcombine.high %v790_v6, %v790_v6  ;;  %v175_v15 = vstv %s702_s23  ;;  %vm190_vm0 = vcmask 1042432   ;;  %s722_s24 = sphi %s811_s24, %s167_s24   ;;  %v718_v12 = vphi %v809_v12, %v252_v12   ;;  %v714_v11 = vphi %v807_v11, %v253_v11   ;;  %v710_v10 = vphi %v805_v10, %v254_v10   ;;  %v706_v9 = vphi %v803_v9, %v255_v9   ;;  %s702_s23 = sphi %s801_s23, %s514_s23   ;;  %v698_v8 = vphi %v799_v8, %v941_v8   ;;  %v694_v7 = vphi %v797_v7, %v940_v7  }
  0x13   : >> { %vm176_vm1 = vcmp.eq.s32.totalorder %v769_v1, %v175_v15  ;;  %vm177_vm2 = vcmp.eq.s32.totalorder %v772_v2, %v175_v15  ;;  %vm178_vm3 = vcmp.eq.s32.totalorder %v775_v3, %v175_v15  ;;  %vm179_vm4 = vcmp.eq.s32.totalorder %v778_v4, %v175_v15 }
  0x14   : >> { %v186_v16 = vsel %vm176_vm1, %v788_v5, 0.0  ;;  %v187_v17 = vsel %vm177_vm2, %v182_v13, 0.0  ;;  %v188_v18 = vsel %vm178_vm3, %v790_v6, 0.0  ;;  %v189_v19 = vsel %vm179_vm4, %v183_v14, 0.0 }
  0x15   : >> { %v191_v20 = vsel %vm190_vm0, %v186_v16, 0.0  ;;  %v192_v21 = vsel %vm190_vm0, %v187_v17, 0.0  ;;  %v194_v22 = vsel %vm190_vm0, %v188_v18, 0.0  ;;  %v196_v24 = vsel %vm190_vm0, %v189_v19, 0.0 }
  0x16   : >> { %v193_v23 = vadd.f32 %v192_v21, %v191_v20  ;;  %v744_v27 = vmov 839922192   ;;  %v210_v30 = vshrl.u32 %v157_v0, 7  ;;  %v200_v31 = vstv %s722_s24  ;;  %s167_s24 = sadd.s32 1, %s722_s24  }
  0x17   : >> { %v207_v28 = vunpack.c.l.s4 %v744_v27  ;;  %vm201_vm5 = vcmp.eq.s32.totalorder %v769_v1, %v200_v31  ;;  %vm202_vm6 = vcmp.eq.s32.totalorder %v772_v2, %v200_v31  ;;  %p164_p4 = scmp.ge.s32.totalorder %s167_s24, 256  }
  0x18   : >> { %v195_v25 = vadd.f32 %v194_v22, %v193_v23  ;;  %s891_s26 = smov (%p164_p4), 0   ;;  %s897_s27 = smov (%p164_p4), 0  }
  0x19   : >> { %v208_v29 = vunpack.c.0.s8 %v207_v28 }
  0x1a   : >> { %v197_v26 = vadd.f32 %v196_v24, %v195_v25 }
  0x1b   : >> { %v211_v32 = vsub.s32 %v208_v29, %v210_v30 }
  0x1c   : >> { %198 = vadd.xlane.f32.xlu0 %v197_v26 }
  0xa9   : >> { %v199_v33 = vpop.xlane.xlu0 %198 }
  0xaa   : >> { %v849_v8 = vsel %vm201_vm5, %v199_v33, %v698_v8   ;;  %v851_v7 = vsel %vm202_vm6, %v199_v33, %v694_v7   ;;  %v212_v36 = vrot.slane %v199_v33, %v211_v32 }
  0xab   : >> { %v938_v34 = vmov %v849_v8  ;;  %v939_v35 = vmov %v851_v7 }
  0xac   : >> { %v214_v37 = vsub.f32 %v788_v5, %v212_v36  ;;  %v215_v38 = vsub.f32 %v790_v6, %v212_v36 }
  0xae   : >> { %v216_v39 = vmul.f32 %v214_v37, %v214_v37  ;;  %v217_v40 = vmul.f32 %v215_v38, %v215_v38 }
  0xb0   : >> { %v220_v41 = vcombine.high %v216_v39, %v216_v39  ;;  %v221_v42 = vcombine.high %v217_v40, %v217_v40  ;;  %v224_v43 = vsel %vm190_vm0, %v216_v39, 0.0  ;;  %v238_v44 = vsel %vm190_vm0, %v217_v40, 0.0 }
  0xb1   : >> { %v225_v45 = vrot.slane %v224_v43, 4  ;;  %v239_v46 = vrot.slane %v238_v44, 4 }
  0xb2   : >> { %v231_v47 = vsel %vm190_vm0, %v220_v41, 0.0  ;;  %v245_v48 = vsel %vm190_vm0, %v221_v42, 0.0 }
  0xb3   : >> { %v226_v49 = vadd.f32 %v225_v45, %v224_v43  ;;  %v232_v50 = vrot.slane %v231_v47, 4  ;;  %v240_v51 = vadd.f32 %v239_v46, %v238_v44  ;;  %v246_v52 = vrot.slane %v245_v48, 4 }
  0xb4   : > { %v294_v43 = vcombine.low (%p164_p4), %v938_v34, %v939_v35  ;;  %v889_v44 = vmov (%p164_p4), 0.0   ;;  %v893_v45 = vmov (%p164_p4), 1e+10   ;;  %v895_v46 = vmov (%p164_p4), 1e+10  }
  0xb5   : >> { %v227_v53 = vrot.slane %v226_v49, 2  ;;  %v233_v54 = vadd.f32 %v232_v50, %v231_v47  ;;  %v241_v55 = vrot.slane %v240_v51, 2  ;;  %v247_v56 = vadd.f32 %v246_v52, %v245_v48 }
  0xb6   : > { %296 = vst [vmem:[%s786_s18] sm:$0x77] (%p164_p4), %v294_v43 }
  0xb7   : >> { %v228_v57 = vadd.f32 %v227_v53, %v226_v49  ;;  %v234_v58 = vrot.slane %v233_v54, 2  ;;  %v242_v59 = vadd.f32 %v241_v55, %v240_v51  ;;  %v248_v60 = vrot.slane %v247_v56, 2 }
  0xb9   : >> { %v229_v61 = vrot.slane %v228_v57, 1  ;;  %v235_v62 = vadd.f32 %v234_v58, %v233_v54  ;;  %v243_v63 = vrot.slane %v242_v59, 1  ;;  %v249_v7 = vadd.f32 %v248_v60, %v247_v56 }
  0xbb   : >> { %v230_v8 = vadd.f32 %v229_v61, %v228_v57  ;;  %v236_v13 = vrot.slane %v235_v62, 1  ;;  %v244_v14 = vadd.f32 %v243_v63, %v242_v59  ;;  %v250_v15 = vrot.slane %v249_v7, 1 }
  0xbd   : >> { %v237_v16 = vadd.f32 %v236_v13, %v235_v62  ;;  %v251_v17 = vadd.f32 %v250_v15, %v249_v7  ;;  %v252_v12 = vmin.f32 %v718_v12, %v230_v8   ;;  %v254_v10 = vmin.f32 %v710_v10, %v244_v14  }
  0xbe   : >> { %v940_v7 = vmov %v939_v35  ;;  %v941_v8 = vmov %v938_v34 }
  0xbf   : >> { %v253_v11 = vmin.f32 %v714_v11, %v237_v16   ;;  %v255_v9 = vmin.f32 %v706_v9, %v251_v17  }
  0xc1   : >> { %v256_v18 = vmax.f32 %v252_v12, %v253_v11  ;;  %v257_v19 = vmax.f32 %v254_v10, %v255_v9 }
  0xc3   : >> { %v258_v20 = vmax.f32 %v256_v18, %v257_v19 }
  0xc5   : >> { %259 = vmax.xlane.f32.xlu0 %v258_v20 }
 0x152   : >> { %v260_v21 = vpop.xlane.xlu0 %259 }
 0x153   : >> { %511 = vpush %v260_v21 }
 0x184   : >> { %s512_s25 = spop %511 }
 0x185   : >> { %v262_v22 = vstv %s512_s25 }
 0x186   : >> { %vm263_vm7 = vcmp.eq.f32.partialorder %v252_v12, %v262_v22  ;;  %vm264_vm8 = vcmp.eq.f32.partialorder %v253_v11, %v262_v22  ;;  %vm265_vm9 = vcmp.eq.f32.partialorder %v254_v10, %v262_v22  ;;  %vm266_vm10 = vcmp.eq.f32.partialorder %v255_v9, %v262_v22 }
 0x187   : >> { %v267_v23 = vsel %vm263_vm7, %v769_v1, 512  ;;  %v268_v24 = vsel %vm264_vm8, %v772_v2, 512  ;;  %v269_v25 = vsel %vm265_vm9, %v775_v3, 512  ;;  %v270_v26 = vsel %vm266_vm10, %v778_v4, 512 }
 0x188   : >> { %vm271_vm11 = vcmp.lt.s32.totalorder %v267_v23, %v268_v24  ;;  %vm273_vm12 = vcmp.lt.s32.totalorder %v269_v25, %v270_v26 }
 0x189   : >> { %v272_v27 = vsel %vm271_vm11, %v267_v23, %v268_v24  ;;  %v274_v28 = vsel %vm273_vm12, %v269_v25, %v270_v26 }
 0x18a   : >> { %vm275_vm13 = vcmp.lt.s32.totalorder %v272_v27, %v274_v28 }
 0x18b   : >> { %v276_v29 = vsel %vm275_vm13, %v272_v27, %v274_v28 }
 0x18c   : >> { %v278_v30 = vshra.s32 %v276_v29, 16  ;;  %v277_v32 = vand.u32 65535, %v276_v29 }
 0x18e   : >> { %v280_v31 = vcvt.s32.f32 %v278_v30  ;;  %v279_v36 = vcvt.s32.f32 %v277_v32 }
 0x190   : >> { %281 = vmin.xlane.f32.xlu1 %v280_v31 }
 0x21d   : >> { %v282_v33 = vpop.xlane.xlu1 %281 }
 0x21e   : >> { %vm283_vm14 = vcmp.eq.f32.partialorder %v280_v31, %v282_v33  ;;  %v288_v38 = vcvt.f32.s32 %v282_v33 }
 0x21f   : >> { %v284_v37 = vsel %vm283_vm14, %v279_v36, inf }
 0x220   : >> { %285 = vmin.xlane.f32.xlu1 %v284_v37  ;;  %v289_v40 = vshll.u32 %v288_v38, 16 }
 0x2ad   : >> { %v286_v39 = vpop.xlane.xlu1 %285 }
 0x2ae   : >> { %v287_v41 = vcvt.f32.s32 %v286_v39 }
 0x2b0   : >> { %v290_v42 = vadd.s32 %v289_v40, %v287_v41 }
 0x2b2   : >> { %513 = vpush %v290_v42 }
 0x2dd   : > { %166 = sbr.rel (!%p164_p4) target bundleno = 18 (0x12), region = 80 }
 0x2e3   : >> { %s514_s23 = spop %513  }
 0x2e4 LB: >> { %v307_v0 = vstv %s730_s26  ;;  %v318_v10 = vstv %s742_s27  ;;  %s302_s27 = sadd.s32 1, %s742_s27   ;;  %s742_s27 = sphi %s897_s27, %s302_s27   ;;  %v738_v46 = vphi %v895_v46, %v339_v46   ;;  %v734_v45 = vphi %v893_v45, %v340_v45   ;;  %s730_s26 = sphi %s891_s26, %s518_s26   ;;  %v726_v44 = vphi %v889_v44, %v942_v44  }
 0x2e5   : >> { %vm308_vm15 = vcmp.eq.s32.totalorder %v769_v1, %v307_v0  ;;  %vm309_vm1 = vcmp.eq.s32.totalorder %v772_v2, %v307_v0  ;;  %vm319_vm2 = vcmp.eq.s32.totalorder %v769_v1, %v318_v10  ;;  %p299_p5 = scmp.ge.s32.totalorder %s302_s27, 128  }
 0x2e6   : >> { %v310_v3 = vsel %vm308_vm15, %v938_v34, 0.0  ;;  %v311_v4 = vsel %vm309_vm1, %v939_v35, 0.0 }
 0x2e7   : >> { %v313_v5 = vsel %vm190_vm0, %v310_v3, 0.0  ;;  %v314_v6 = vsel %vm190_vm0, %v311_v4, 0.0 }
 0x2e8   : >> { %v315_v9 = vadd.f32 %v314_v6, %v313_v5 }
 0x2ea   : >> { %316 = vadd.xlane.f32.xlu0 %v315_v9 }
 0x377   : >> { %v317_v11 = vpop.xlane.xlu0 %316 }
 0x378   : >> { %v320_v12 = vsel %vm319_vm2, %v317_v11, %v726_v44   ;;  %v321_v47 = vsub.f32 %v938_v34, %v317_v11  ;;  %v322_v48 = vsub.f32 %v939_v35, %v317_v11 }
 0x379   : >> { %v942_v44 = vmov %v320_v12  ;;  %367 = vst [vmem:[%s795_s22] sm:$0x7] (%p299_p5), %v320_v12 }
 0x37a   : >> { %v323_v49 = vmul.f32 %v321_v47, %v321_v47  ;;  %v324_v50 = vmul.f32 %v322_v48, %v322_v48 }
 0x37c   : >> { %v325_v51 = vsel %vm190_vm0, %v323_v49, 0.0  ;;  %v332_v52 = vsel %vm190_vm0, %v324_v50, 0.0 }
 0x37d   : >> { %v326_v53 = vrot.slane %v325_v51, 4  ;;  %v333_v54 = vrot.slane %v332_v52, 4 }
 0x37f   : >> { %v327_v55 = vadd.f32 %v326_v53, %v325_v51  ;;  %v334_v56 = vadd.f32 %v333_v54, %v332_v52 }
 0x381   : >> { %v328_v57 = vrot.slane %v327_v55, 2  ;;  %v335_v58 = vrot.slane %v334_v56, 2 }
 0x383   : >> { %v329_v59 = vadd.f32 %v328_v57, %v327_v55  ;;  %v336_v60 = vadd.f32 %v335_v58, %v334_v56 }
 0x385   : >> { %v330_v61 = vrot.slane %v329_v59, 1  ;;  %v337_v62 = vrot.slane %v336_v60, 1 }
 0x387   : >> { %v331_v63 = vadd.f32 %v330_v61, %v329_v59  ;;  %v338_v7 = vadd.f32 %v337_v62, %v336_v60 }
 0x389   : >> { %v339_v46 = vmin.f32 %v738_v46, %v331_v63   ;;  %v340_v45 = vmin.f32 %v734_v45, %v338_v7  }
 0x38b   : >> { %v341_v8 = vmax.f32 %v339_v46, %v340_v45 }
 0x38d   : >> { %342 = vmax.xlane.f32.xlu0 %v341_v8 }
 0x41a   : >> { %v343_v13 = vpop.xlane.xlu0 %342 }
 0x41b   : >> { %515 = vpush %v343_v13 }
 0x44c   : >> { %s516_s28 = spop %515 }
 0x44d   : >> { %v345_v14 = vstv %s516_s28 }
 0x44e   : >> { %vm346_vm3 = vcmp.eq.f32.partialorder %v339_v46, %v345_v14  ;;  %vm347_vm4 = vcmp.eq.f32.partialorder %v340_v45, %v345_v14 }
 0x44f   : >> { %v348_v15 = vsel %vm346_vm3, %v769_v1, 256  ;;  %v349_v16 = vsel %vm347_vm4, %v772_v2, 256 }
 0x450   : >> { %vm350_vm5 = vcmp.lt.s32.totalorder %v348_v15, %v349_v16 }
 0x451   : >> { %v351_v17 = vsel %vm350_vm5, %v348_v15, %v349_v16 }
 0x452   : >> { %v353_v18 = vshra.s32 %v351_v17, 16  ;;  %v352_v20 = vand.u32 65535, %v351_v17 }
 0x454   : >> { %v355_v19 = vcvt.s32.f32 %v353_v18  ;;  %v354_v22 = vcvt.s32.f32 %v352_v20 }
 0x456   : >> { %356 = vmin.xlane.f32.xlu1 %v355_v19 }
 0x4e3   : >> { %v357_v21 = vpop.xlane.xlu1 %356 }
 0x4e4   : >> { %vm358_vm6 = vcmp.eq.f32.partialorder %v355_v19, %v357_v21  ;;  %v363_v24 = vcvt.f32.s32 %v357_v21 }
 0x4e5   : >> { %v359_v23 = vsel %vm358_vm6, %v354_v22, inf }
 0x4e6   : >> { %360 = vmin.xlane.f32.xlu1 %v359_v23  ;;  %v364_v26 = vshll.u32 %v363_v24, 16 }
 0x573   : >> { %v361_v25 = vpop.xlane.xlu1 %360 }
 0x574   : >> { %v362_v27 = vcvt.f32.s32 %v361_v25 }
 0x576   : >> { %v365_v28 = vadd.s32 %v364_v26, %v362_v27 }
 0x578   : >> { %517 = vpush %v365_v28 }
 0x5a3   : > { %301 = sbr.rel (!%p299_p5) target bundleno = 740 (0x2e4), region = 91 }
 0x5a9   : >> { %s518_s26 = spop %517  }
 0x5aa PF: > { %s13_s9 = sadd.s32 1, %s690_s9  }
 0x5ab   : > { %p10_p6 = scmp.ge.s32.totalorder %s13_s9, 4  }
 0x5ad   :  { %12 = sbr.rel (!%p10_p6) target bundleno = 1 (0x1), region = 102 }

</bundles_post_ra>
